<compile_context>
chip_gen: v7x
topology: tpu7x:2x2x1
jax: 0.10.0
libtpu: 0.0.40
codegen_flags: <defaults>
</compile_context>

<pallas_src>
import jax
import jax.numpy as jnp
from jax.experimental import pallas as pl
from jax.experimental.pallas import tpu as pltpu

_C = 512          # lane width per slab (multiple of 128)
_TR_MAX = 512     # max sublane rows per grid step (multiple of _STRIP)
_STRIP = 16       # in-kernel sublane strip (multiple of 8)


def _round_up(n, m):
    return ((n + m - 1) // m) * m


def _pack_params(w1, b1, w2, b2, w3, b3):
    """Fold sigmoid(z) = 0.5*tanh(0.5*z) + 0.5 into the affine layers, flatten to (16,).

    Layout (f32): [W1'(4), b1'(2), W2'(4), b2'(2), W3'(2), b3'(1), pad(1)];
    weights stored row-major as (in, out).
    """
    w1 = jnp.asarray(w1, jnp.float32); b1 = jnp.asarray(b1, jnp.float32).reshape(-1)
    w2 = jnp.asarray(w2, jnp.float32); b2 = jnp.asarray(b2, jnp.float32).reshape(-1)
    w3 = jnp.asarray(w3, jnp.float32); b3 = jnp.asarray(b3, jnp.float32).reshape(-1)
    w1f = 0.5 * w1
    b1f = 0.5 * b1
    w2f = 0.25 * w2
    b2f = 0.25 * jnp.sum(w2, axis=0) + 0.5 * b2
    w3f = 0.5 * w3
    b3f = 0.5 * jnp.sum(w3, axis=0) + b3
    return jnp.concatenate([
        w1f.reshape(-1), b1f,
        w2f.reshape(-1), b2f,
        w3f.reshape(-1), b3f,
        jnp.zeros((1,), jnp.float32),   # pad to 16
    ])


def _mlp_kernel(p_ref, x_ref, o_ref):
    # p_ref: SMEM (16,) folded scalar params
    # x_ref: VMEM (2, tr, C) per-feature sublane-dense input slabs
    # o_ref: VMEM (tr, C)    sublane+lane dense output slab
    p = [p_ref[i] for i in range(15)]          # read the 15 scalars once
    tr = o_ref.shape[0]

    # Statically-unrolled strip loop: each 16-row strip keeps its ~40 live vregs in
    # registers (no full-tile VMEM temporaries); all slice offsets are compile-time.
    for s in range(tr // _STRIP):
        r = s * _STRIP
        x0 = x_ref[0, pl.ds(r, _STRIP), :]     # (16, C)
        x1 = x_ref[1, pl.ds(r, _STRIP), :]     # (16, C)
        # Layer 1 (folded sigmoid): t1 = tanh(x @ W1' + b1')
        t10 = jnp.tanh(x0 * p[0] + x1 * p[2] + p[4])
        t11 = jnp.tanh(x0 * p[1] + x1 * p[3] + p[5])
        # Layer 2 (folded sigmoid): t2 = tanh(t1 @ W2' + b2')
        t20 = jnp.tanh(t10 * p[6] + t11 * p[8] + p[10])
        t21 = jnp.tanh(t10 * p[7] + t11 * p[9] + p[11])
        # Layer 3: out = t2 @ W3' + b3'
        o_ref[pl.ds(r, _STRIP), :] = (t20 * p[12] + t21 * p[13] + p[14]).astype(o_ref.dtype)


def on_topic_regression_forward(x, w1, b1, w2, b2, w3, b3):
    """x: (B, 2) -> (B, 1) float32.  Weights stored as (in, out)."""
    B = x.shape[0]
    params = _pack_params(w1, b1, w2, b2, w3, b3)

    # Sublane-dense per-feature slabs: batch index b -> (row, lane) = (b // C, b % C).
    rows = -(-B // _C)
    R = _round_up(max(rows, 1), _STRIP)
    tr = min(_TR_MAX, R)
    R = _round_up(R, tr)
    b_pad = R * _C

    xf = x.astype(jnp.float32)
    if b_pad != B:                              # skip pad when already aligned
        xf = jnp.pad(xf, ((0, b_pad - B), (0, 0)))
    x_t = xf.T.reshape(2, R, _C)                # single layout copy: (2, R, C)

    out = pl.pallas_call(
        _mlp_kernel,
        out_shape=jax.ShapeDtypeStruct((R, _C), jnp.float32),
        grid=(R // tr,),
        in_specs=[
            pl.BlockSpec(memory_space=pltpu.MemorySpace.SMEM),   # 15 folded scalars
            pl.BlockSpec((2, tr, _C), lambda i: (0, i, 0)),      # per-feature input slabs
        ],
        out_specs=pl.BlockSpec((tr, _C), lambda i: (i, 0)),      # dense output slab
        compiler_params=pltpu.CompilerParams(
            dimension_semantics=("parallel",),                   # both TCs on v7x
        ),
    )(params, x_t)

    return out.reshape(b_pad)[:B].reshape(B, 1)


def init_params(key):
    """Deterministic synthetic init matching nn.Linear shapes (stored as (in, out))."""
    ks = jax.random.split(key, 6)
    w1 = jax.random.uniform(ks[0], (2, 2), jnp.float32, -0.5, 0.5)
    b1 = jax.random.uniform(ks[1], (2,), jnp.float32, -0.5, 0.5)
    w2 = jax.random.uniform(ks[2], (2, 2), jnp.float32, -0.5, 0.5)
    b2 = jax.random.uniform(ks[3], (2,), jnp.float32, -0.5, 0.5)
    w3 = jax.random.uniform(ks[4], (2, 1), jnp.float32, -0.5, 0.5)
    b3 = jax.random.uniform(ks[5], (1,), jnp.float32, -0.5, 0.5)
    return w1, b1, w2, b2, w3, b3


def reference_forward(x, w1, b1, w2, b2, w3, b3):
    h1 = jax.nn.sigmoid(x @ w1 + b1)
    h2 = jax.nn.sigmoid(h1 @ w2 + b2)
    return h2 @ w3 + b3


if __name__ == "__main__":
    key = jax.random.PRNGKey(0)
    k_x, k_p = jax.random.split(key)
    batch = 8
    x = jax.random.normal(k_x, (batch, 2), jnp.float32)
    params = init_params(k_p)

    out = on_topic_regression_forward(x, *params)
    out = jax.block_until_ready(out)

    ref = reference_forward(x, *params)
    assert out.shape == (batch, 1)
    assert jnp.allclose(out, ref, atol=1e-5, rtol=1e-5)
    print("KERNEL_OK")
</pallas_src>

<mosaic_0001>
module attributes {stable_mosaic.version = 11 : i64} {
  func.func @_mlp_kernel(%arg0: i32, %arg1: memref<16xf32, #tpu.memory_space<smem>>, %arg2: memref<2x16x512xf32, #tpu.memory_space<vmem>>, %arg3: memref<16x512xf32, #tpu.memory_space<vmem>>) attributes {dimension_semantics = [#tpu.dimension_semantics<parallel>], iteration_bounds = array<i64: 1>, scalar_prefetch = 0 : i64, scratch_operands = 0 : i64, tpu.core_type = #tpu.core_type<tc>, window_params = [{transform_indices = @transform_0, window_bounds = array<i64: 16>}, {transform_indices = @transform_1, window_bounds = array<i64: 2, 16, 512>}, {transform_indices = @transform_2, window_bounds = array<i64: 16, 512>}]} {
    %c0 = arith.constant 0 : index
    %0 = memref.load %arg1[%c0] : memref<16xf32, #tpu.memory_space<smem>>
    %c1 = arith.constant 1 : index
    %1 = memref.load %arg1[%c1] : memref<16xf32, #tpu.memory_space<smem>>
    %c2 = arith.constant 2 : index
    %2 = memref.load %arg1[%c2] : memref<16xf32, #tpu.memory_space<smem>>
    %c3 = arith.constant 3 : index
    %3 = memref.load %arg1[%c3] : memref<16xf32, #tpu.memory_space<smem>>
    %c4 = arith.constant 4 : index
    %4 = memref.load %arg1[%c4] : memref<16xf32, #tpu.memory_space<smem>>
    %c5 = arith.constant 5 : index
    %5 = memref.load %arg1[%c5] : memref<16xf32, #tpu.memory_space<smem>>
    %c6 = arith.constant 6 : index
    %6 = memref.load %arg1[%c6] : memref<16xf32, #tpu.memory_space<smem>>
    %c7 = arith.constant 7 : index
    %7 = memref.load %arg1[%c7] : memref<16xf32, #tpu.memory_space<smem>>
    %c8 = arith.constant 8 : index
    %8 = memref.load %arg1[%c8] : memref<16xf32, #tpu.memory_space<smem>>
    %c9 = arith.constant 9 : index
    %9 = memref.load %arg1[%c9] : memref<16xf32, #tpu.memory_space<smem>>
    %c10 = arith.constant 10 : index
    %10 = memref.load %arg1[%c10] : memref<16xf32, #tpu.memory_space<smem>>
    %c11 = arith.constant 11 : index
    %11 = memref.load %arg1[%c11] : memref<16xf32, #tpu.memory_space<smem>>
    %c12 = arith.constant 12 : index
    %12 = memref.load %arg1[%c12] : memref<16xf32, #tpu.memory_space<smem>>
    %c13 = arith.constant 13 : index
    %13 = memref.load %arg1[%c13] : memref<16xf32, #tpu.memory_space<smem>>
    %c14 = arith.constant 14 : index
    %14 = memref.load %arg1[%c14] : memref<16xf32, #tpu.memory_space<smem>>
    %c0_0 = arith.constant 0 : index
    %c0_1 = arith.constant 0 : index
    %c0_2 = arith.constant 0 : index
    %15 = vector.load %arg2[%c0_0, %c0_1, %c0_2] : memref<2x16x512xf32, #tpu.memory_space<vmem>>, vector<1x16x512xf32>
    %16 = vector.shape_cast %15 : vector<1x16x512xf32> to vector<16x512xf32>
    %c1_3 = arith.constant 1 : index
    %c0_4 = arith.constant 0 : index
    %c0_5 = arith.constant 0 : index
    %17 = vector.load %arg2[%c1_3, %c0_4, %c0_5] : memref<2x16x512xf32, #tpu.memory_space<vmem>>, vector<1x16x512xf32>
    %18 = vector.shape_cast %17 : vector<1x16x512xf32> to vector<16x512xf32>
    %19 = vector.broadcast %0 : f32 to vector<16x512xf32>
    %20 = arith.mulf %16, %19 : vector<16x512xf32>
    %21 = vector.broadcast %2 : f32 to vector<16x512xf32>
    %22 = arith.mulf %18, %21 : vector<16x512xf32>
    %23 = arith.addf %20, %22 : vector<16x512xf32>
    %24 = vector.broadcast %4 : f32 to vector<16x512xf32>
    %25 = arith.addf %23, %24 : vector<16x512xf32>
    %26 = math.tanh %25 : vector<16x512xf32>
    %27 = vector.broadcast %1 : f32 to vector<16x512xf32>
    %28 = arith.mulf %16, %27 : vector<16x512xf32>
    %29 = vector.broadcast %3 : f32 to vector<16x512xf32>
    %30 = arith.mulf %18, %29 : vector<16x512xf32>
    %31 = arith.addf %28, %30 : vector<16x512xf32>
    %32 = vector.broadcast %5 : f32 to vector<16x512xf32>
    %33 = arith.addf %31, %32 : vector<16x512xf32>
    %34 = math.tanh %33 : vector<16x512xf32>
    %35 = vector.broadcast %6 : f32 to vector<16x512xf32>
    %36 = arith.mulf %26, %35 : vector<16x512xf32>
    %37 = vector.broadcast %8 : f32 to vector<16x512xf32>
    %38 = arith.mulf %34, %37 : vector<16x512xf32>
    %39 = arith.addf %36, %38 : vector<16x512xf32>
    %40 = vector.broadcast %10 : f32 to vector<16x512xf32>
    %41 = arith.addf %39, %40 : vector<16x512xf32>
    %42 = math.tanh %41 : vector<16x512xf32>
    %43 = vector.broadcast %7 : f32 to vector<16x512xf32>
    %44 = arith.mulf %26, %43 : vector<16x512xf32>
    %45 = vector.broadcast %9 : f32 to vector<16x512xf32>
    %46 = arith.mulf %34, %45 : vector<16x512xf32>
    %47 = arith.addf %44, %46 : vector<16x512xf32>
    %48 = vector.broadcast %11 : f32 to vector<16x512xf32>
    %49 = arith.addf %47, %48 : vector<16x512xf32>
    %50 = math.tanh %49 : vector<16x512xf32>
    %51 = vector.broadcast %12 : f32 to vector<16x512xf32>
    %52 = arith.mulf %42, %51 : vector<16x512xf32>
    %53 = vector.broadcast %13 : f32 to vector<16x512xf32>
    %54 = arith.mulf %50, %53 : vector<16x512xf32>
    %55 = arith.addf %52, %54 : vector<16x512xf32>
    %56 = vector.broadcast %14 : f32 to vector<16x512xf32>
    %57 = arith.addf %55, %56 : vector<16x512xf32>
    %c0_6 = arith.constant 0 : index
    %c0_7 = arith.constant 0 : index
    %58 = vector.load %arg3[%c0_6, %c0_7] : memref<16x512xf32, #tpu.memory_space<vmem>>, vector<16x512xf32>
    tpu.vector_store %arg3[%c0_6, %c0_7], %57 {strides = array<i32>} : memref<16x512xf32, #tpu.memory_space<vmem>>, vector<16x512xf32>,
    return
  }
  func.func @transform_0(%arg0: i32) -> i32 {
    %c0_i32 = arith.constant 0 : i32
    %c0_i32_0 = arith.constant 0 : i32
    return %c0_i32 : i32
  }
  func.func @transform_1(%arg0: i32) -> (i32, i32, i32) {
    %c0_i32 = arith.constant 0 : i32
    %c0_i32_0 = arith.constant 0 : i32
    %c0_i32_1 = arith.constant 0 : i32
    return %c0_i32, %arg0, %c0_i32_0 : i32, i32, i32
  }
  func.func @transform_2(%arg0: i32) -> (i32, i32) {
    %c0_i32 = arith.constant 0 : i32
    %c0_i32_0 = arith.constant 0 : i32
    return %arg0, %c0_i32 : i32, i32
  }
}

</mosaic_0001>

<bundles_post_ra>
// kernel: tpu_custom_call.1
= control target key start
LH: loop header
LB: loop body
LE: loop exit
PB: predicated region body
PF: predicated region fallthrough
CT: control target
= control target key end

     0   :  { %7 = vsyncpa [#allocation5], 0  ;;  %s674_s0 = inlined_call_operand.hbm [shape: f32[16], index: 0, kind: input, shape index: {}]   ;;  %s675_s1 = inlined_call_operand.hbm [shape: f32[2,16,512], index: 1, kind: input, shape index: {}]   ;;  %s676_s2 = inlined_call_operand.hbm [shape: f32[16,512], index: 2, kind: output, shape index: {}]  }
   0x1   :  { %8 = vsyncpa [#allocation3], 0 }
   0x2   :  { %9 = vsyncpa [#allocation4], 0  ;;  %s385_s11 = scalar_lea.hbm %s674_s0, 16 }
   0x3   :  { %p386_p0 = scmp.ne.s32.totalorder %s674_s0, %s385_s11  ;;  %p389_p1 = scmp.lt.u32.totalorder %s385_s11, %s674_s0 }
   0x5   :  { %p391_p2 = pnand %p389_p1, %p386_p0 }
   0x7   :  { %394 = shalt.err (!%p391_p2)
}
   0x8   :  { %s445_s16 = smov [#allocation2]   ;;  %s446_s19 = smov [#allocation6]  }
   0x9   :  { %17 = dma.hbm_to_smem %s674_s0, 16, %s445_s16, [#allocation5]  }
   0xa   :  { %s23_s20 = sshll.u32 %s446_s19, 4  ;;  %s395_s23 = scalar_lea.hbm %s675_s1, 2048  ;;  %s24_s20 = int_to_ptr.vmem [resolvable:$true] %s23_s20 }
   0xb   :  { %p396_p3 = scmp.ne.s32.totalorder %s675_s1, %s395_s23  ;;  %p399_p4 = scmp.lt.u32.totalorder %s395_s23, %s675_s1 }
   0xd   :  { %p401_p5 = pnand %p399_p4, %p396_p3 }
   0xf   :  { %404 = shalt.err (!%p401_p5)
}
  0x10   :  { %s405_s28 = scalar_lea.vmem %s24_s20, 2048  ;;  %p410_p7 = scmp.lt.s32.totalorder %s24_s20, %s24_s20 }
  0x11   :  { %p406_p6 = scmp.ne.s32.totalorder %s24_s20, %s405_s28  ;;  %p411_p8 = scmp.lt.s32.totalorder %s405_s28, %s405_s28 }
  0x13   :  { %p412_p9 = por %p411_p8, %p410_p7 }
  0x15   :  { %p413_p10 = pnand %p412_p9, %p406_p6 }
  0x17   :  { %416 = shalt.err (!%p413_p10)
}
  0x18   :  { %s447_s0 = smov 512   ;;  %s448_s29 = smov 32  }
  0x19   :  { %29 = dma.hbm_to_vmem [thread:$0]  %s675_s1, 2048, %s24_s20, [#allocation3], %s447_s0, %s447_s0, %s448_s29  }
  0x1a   :  { %439 = dma.done.wait [#allocation5], 16  }
  0x1b   :  { %440 = vsyncadd [#allocation5], 4294967280 }
  0x1c   :  { %441 = dma.done.wait [#allocation3], 2048  }
  0x1d   :  { %442 = vsyncadd [#allocation3], 4294965248 }
  0x1e   :  { %36 = sfence }
  0x1f   :  { %s37_s4 = sld [smem:[#allocation2]]  ;;  %s302_s5 = sld [smem:[#allocation2 + $0x1]]  ;;  %v52_v0 = vld [vmem:[#allocation6] sm:$0xff]  ;;  %v53_v4 = vld [vmem:[#allocation6 + $0x8] sm:$0xff]  ;;  %v54_v20 = vld [vmem:[#allocation6 + $0x10] sm:$0xff] }
  0x20   :  { %s303_s6 = sld [smem:[#allocation2 + $0x2]]  ;;  %s304_s7 = sld [smem:[#allocation2 + $0x3]]  ;;  %v61_v1 = vld [vmem:[#allocation6 + $0x40] sm:$0xff]  ;;  %v62_v5 = vld [vmem:[#allocation6 + $0x48] sm:$0xff]  ;;  %v63_v25 = vld [vmem:[#allocation6 + $0x50] sm:$0xff] }
  0x21   :  { %s305_s8 = sld [smem:[#allocation2 + $0x4]]  ;;  %s306_s9 = sld [smem:[#allocation2 + $0x5]]  ;;  %v55_v30 = vld [vmem:[#allocation6 + $0x18] sm:$0xff]  ;;  %v56_v39 = vld [vmem:[#allocation6 + $0x20] sm:$0xff]  ;;  %v57_v51 = vld [vmem:[#allocation6 + $0x28] sm:$0xff] }
  0x22   :  { %s307_s10 = sld [smem:[#allocation2 + $0x6]]  ;;  %s308_s11 = sld [smem:[#allocation2 + $0x7]]  ;;  %v64_v31 = vld [vmem:[#allocation6 + $0x58] sm:$0xff]  ;;  %v65_v43 = vld [vmem:[#allocation6 + $0x60] sm:$0xff]  ;;  %v66_v52 = vld [vmem:[#allocation6 + $0x68] sm:$0xff] }
  0x23   :  { %s309_s12 = sld [smem:[#allocation2 + $0x8]]  ;;  %s310_s13 = sld [smem:[#allocation2 + $0x9]]  ;;  %v58_v63 = vld [vmem:[#allocation6 + $0x30] sm:$0xff] }
  0x24   :  { %s311_s14 = sld [smem:[#allocation2 + $0xa]]  ;;  %s312_s15 = sld [smem:[#allocation2 + $0xb]] }
  0x25   :  { %s492_s1 = sld [smem:[#allocation2 + $0xc]]  ;;  %v494_v2 = vstv %s37_s4  ;;  %v496_v3 = vstv %s302_s5  ;;  %s550_s16 = sld [smem:[#allocation2 + $0xd]] }
  0x26   :  { %v70_v6 = vmul.f32 %v494_v2, %v52_v0  ;;  %v499_v7 = vstv %s303_s6  ;;  %v113_v8 = vmul.f32 %v496_v3, %v52_v0  ;;  %v502_v9 = vstv %s304_s7  ;;  %v67_v0 = vld [vmem:[#allocation6 + $0x70] sm:$0xff]  ;;  %s600_s17 = sld [smem:[#allocation2 + $0xe]]  ;;  %s449_s18 = smov [#allocation7]  }
  0x27   :  { %v79_v10 = vmul.f32 %v499_v7, %v61_v1  ;;  %v122_v11 = vmul.f32 %v502_v9, %v61_v1  ;;  %v506_v12 = vstv %s305_s8  ;;  %v508_v13 = vstv %s306_s9  ;;  %s289_s19 = sshll.u32 %s449_s18, 4  ;;  %s290_s19 = int_to_ptr.vmem [resolvable:$true] %s289_s19 }
  0x28   :  { %v71_v14 = vmul.f32 %v494_v2, %v53_v4  ;;  %v80_v15 = vmul.f32 %v499_v7, %v62_v5  ;;  %v512_v18 = vstv %s307_s10  ;;  %v514_v19 = vstv %s308_s11  ;;  %s417_s20 = scalar_lea.vmem %s290_s19, 1024  ;;  %p422_p12 = scmp.lt.s32.totalorder %s290_s19, %s290_s19 }
  0x29   :  { %v87_v16 = vadd.f32 %v79_v10, %v70_v6  ;;  %v130_v17 = vadd.f32 %v122_v11, %v113_v8  ;;  %v516_v21 = vstv %s309_s12  ;;  %v518_v22 = vstv %s310_s13  ;;  %p418_p11 = scmp.ne.s32.totalorder %s290_s19, %s417_s20  ;;  %p423_p13 = scmp.lt.s32.totalorder %s417_s20, %s417_s20 }
  0x2a   :  { %v88_v23 = vadd.f32 %v80_v15, %v71_v14  ;;  %v114_v24 = vmul.f32 %v496_v3, %v53_v4  ;;  %v523_v28 = vstv %s311_s14  ;;  %v525_v29 = vstv %s312_s15 }
  0x2b   :  { %v96_v26 = vadd.f32 %v506_v12, %v87_v16  ;;  %v139_v27 = vadd.f32 %v508_v13, %v130_v17  ;;  %v528_v32 = vstv %s492_s1  ;;  %v123_v34 = vmul.f32 %v502_v9, %v62_v5  ;;  %p424_p0 = por %p423_p13, %p422_p12 }
  0x2c   :  { %v97_v33 = vadd.f32 %v506_v12, %v88_v23  ;;  %v72_v35 = vmul.f32 %v494_v2, %v54_v20  ;;  %v81_v36 = vmul.f32 %v499_v7, %v63_v25  ;;  %v115_v37 = vmul.f32 %v496_v3, %v54_v20 }
  0x2d   :  { %321 = vtanh.f32 %v96_v26  ;;  %v124_v38 = vmul.f32 %v502_v9, %v63_v25  ;;  %v131_v40 = vadd.f32 %v123_v34, %v114_v24  ;;  %v73_v41 = vmul.f32 %v494_v2, %v55_v30  ;;  %p425_p1 = pnand %p424_p0, %p418_p11 }
  0x2e   :  { %323 = vtanh.f32 %v139_v27  ;;  %v82_v42 = vmul.f32 %v499_v7, %v64_v31  ;;  %v89_v44 = vadd.f32 %v81_v36, %v72_v35  ;;  %v116_v46 = vmul.f32 %v496_v3, %v55_v30  ;;  %v563_v30 = vld [vmem:[#allocation6 + $0x38] sm:$0xff] }
  0x2f   :  { %325 = vtanh.f32 %v97_v33  ;;  %v132_v45 = vadd.f32 %v124_v38, %v115_v37  ;;  %v140_v47 = vadd.f32 %v508_v13, %v131_v40  ;;  %v125_v49 = vmul.f32 %v502_v9, %v64_v31  ;;  %v568_v36 = vld [vmem:[#allocation6 + $0x78] sm:$0xff] }
  0x30   :  { %v90_v48 = vadd.f32 %v82_v42, %v73_v41  ;;  %v74_v50 = vmul.f32 %v494_v2, %v56_v39  ;;  %v98_v53 = vadd.f32 %v506_v12, %v89_v44  ;;  %v83_v55 = vmul.f32 %v499_v7, %v65_v43 }
  0x31   :  { %v141_v54 = vadd.f32 %v508_v13, %v132_v45  ;;  %v117_v56 = vmul.f32 %v496_v3, %v56_v39  ;;  %327 = vtanh.f32 %v140_v47  ;;  %v133_v58 = vadd.f32 %v125_v49, %v116_v46 }
  0x32   :  { %v99_v57 = vadd.f32 %v506_v12, %v90_v48  ;;  %v126_v59 = vmul.f32 %v502_v9, %v65_v43  ;;  %329 = vtanh.f32 %v98_v53  ;;  %v91_v60 = vadd.f32 %v83_v55, %v74_v50 }
  0x33   :  { %v75_v61 = vmul.f32 %v494_v2, %v57_v51  ;;  %v84_v62 = vmul.f32 %v499_v7, %v66_v52  ;;  %331 = vtanh.f32 %v141_v54  ;;  %v142_v1 = vadd.f32 %v508_v13, %v133_v58 }
  0x34   :  { %v134_v4 = vadd.f32 %v126_v59, %v117_v56  ;;  %v118_v5 = vmul.f32 %v496_v3, %v57_v51  ;;  %333 = vtanh.f32 %v99_v57  ;;  %v100_v6 = vadd.f32 %v506_v12, %v91_v60 }
  0x35   :  { %v92_v8 = vadd.f32 %v84_v62, %v75_v61  ;;  %v127_v10 = vmul.f32 %v502_v9, %v66_v52  ;;  %335 = vtanh.f32 %v142_v1  ;;  %v76_v14 = vmul.f32 %v494_v2, %v58_v63 }
  0x36   :  { %v143_v11 = vadd.f32 %v508_v13, %v134_v4  ;;  %v85_v15 = vmul.f32 %v499_v7, %v67_v0  ;;  %337 = vtanh.f32 %v100_v6  ;;  %v119_v23 = vmul.f32 %v496_v3, %v58_v63 }
  0x37   :  { %v322_v16 = vpop.eup %321  ;;  %v101_v17 = vadd.f32 %v506_v12, %v92_v8  ;;  %v135_v20 = vadd.f32 %v127_v10, %v118_v5  ;;  %v128_v40 = vmul.f32 %v502_v9, %v67_v0  ;;  %v77_v43 = vmul.f32 %v494_v2, %v563_v30 }
  0x38   :  { %v324_v24 = vpop.eup %323  ;;  %v156_v25 = vmul.f32 %v322_v16, %v512_v18  ;;  %v199_v26 = vmul.f32 %v322_v16, %v514_v19  ;;  %339 = vtanh.f32 %v143_v11  ;;  %v93_v27 = vadd.f32 %v85_v15, %v76_v14 }
  0x39   :  { %v326_v31 = vpop.eup %325  ;;  %v165_v33 = vmul.f32 %v324_v24, %v516_v21  ;;  %v208_v34 = vmul.f32 %v324_v24, %v518_v22  ;;  %341 = vtanh.f32 %v101_v17  ;;  %v144_v35 = vadd.f32 %v508_v13, %v135_v20 }
  0x3a   :  { %v157_v37 = vmul.f32 %v326_v31, %v512_v18  ;;  %v200_v38 = vmul.f32 %v326_v31, %v514_v19  ;;  %v102_v39 = vadd.f32 %v506_v12, %v93_v27  ;;  %v577_v45 = vstv %s550_s16 }
  0x3b   :  { %v173_v41 = vadd.f32 %v165_v33, %v156_v25  ;;  %v216_v42 = vadd.f32 %v208_v34, %v199_v26  ;;  %343 = vtanh.f32 %v144_v35  ;;  %v328_v44 = vpop.eup %327  ;;  %v136_v46 = vadd.f32 %v128_v40, %v119_v23 }
  0x3c   :  { %345 = vtanh.f32 %v102_v39  ;;  %v86_v47 = vmul.f32 %v499_v7, %v568_v36  ;;  %v330_v48 = vpop.eup %329  ;;  %v166_v51 = vmul.f32 %v328_v44, %v516_v21  ;;  %v209_v52 = vmul.f32 %v328_v44, %v518_v22 }
  0x3d   :  { %v182_v49 = vadd.f32 %v523_v28, %v173_v41  ;;  %v225_v50 = vadd.f32 %v525_v29, %v216_v42  ;;  %v332_v53 = vpop.eup %331  ;;  %v158_v2 = vmul.f32 %v330_v48, %v512_v18  ;;  %v201_v54 = vmul.f32 %v330_v48, %v514_v19 }
  0x3e   :  { %v145_v55 = vadd.f32 %v508_v13, %v136_v46  ;;  %v94_v56 = vadd.f32 %v86_v47, %v77_v43  ;;  %v334_v57 = vpop.eup %333  ;;  %v174_v7 = vadd.f32 %v166_v51, %v157_v37  ;;  %v217_v58 = vadd.f32 %v209_v52, %v200_v38 }
  0x3f   :  { %347 = vtanh.f32 %v182_v49  ;;  %v167_v59 = vmul.f32 %v332_v53, %v516_v21  ;;  %v336_v60 = vpop.eup %335  ;;  %v210_v61 = vmul.f32 %v332_v53, %v518_v22  ;;  %v159_v62 = vmul.f32 %v334_v57, %v512_v18 }
  0x40   :  { %349 = vtanh.f32 %v225_v50  ;;  %v202_v63 = vmul.f32 %v334_v57, %v514_v19  ;;  %v338_v0 = vpop.eup %337  ;;  %v183_v1 = vadd.f32 %v523_v28, %v174_v7  ;;  %v226_v4 = vadd.f32 %v525_v29, %v217_v58 }
  0x41   :  { %v175_v5 = vadd.f32 %v167_v59, %v158_v2  ;;  %v168_v6 = vmul.f32 %v336_v60, %v516_v21  ;;  %v218_v10 = vadd.f32 %v210_v61, %v201_v54  ;;  %v211_v11 = vmul.f32 %v336_v60, %v518_v22 }
  0x42   :  { %v340_v8 = vpop.eup %339  ;;  %v160_v14 = vmul.f32 %v338_v0, %v512_v18  ;;  %v203_v15 = vmul.f32 %v338_v0, %v514_v19  ;;  %351 = vtanh.f32 %v183_v1  ;;  %v120_v46 = vmul.f32 %v496_v3, %v563_v30 }
  0x43   :  { %v342_v16 = vpop.eup %341  ;;  %v184_v17 = vadd.f32 %v523_v28, %v175_v5  ;;  %v176_v20 = vadd.f32 %v168_v6, %v159_v62  ;;  %v169_v23 = vmul.f32 %v340_v8, %v516_v21  ;;  %353 = vtanh.f32 %v226_v4 }
  0x44   :  { %v227_v24 = vadd.f32 %v525_v29, %v218_v10  ;;  %v219_v25 = vadd.f32 %v211_v11, %v202_v63  ;;  %v212_v26 = vmul.f32 %v340_v8, %v518_v22  ;;  %v161_v34 = vmul.f32 %v342_v16, %v512_v18 }
  0x45   :  { %v344_v27 = vpop.eup %343  ;;  %355 = vtanh.f32 %v184_v17  ;;  %v185_v31 = vadd.f32 %v523_v28, %v176_v20  ;;  %v177_v33 = vadd.f32 %v169_v23, %v160_v14  ;;  %v204_v41 = vmul.f32 %v342_v16, %v514_v19 }
  0x46   :  { %v346_v35 = vpop.eup %345  ;;  %357 = vtanh.f32 %v227_v24  ;;  %v228_v37 = vadd.f32 %v525_v29, %v219_v25  ;;  %v220_v38 = vadd.f32 %v212_v26, %v203_v15  ;;  %v170_v39 = vmul.f32 %v344_v27, %v516_v21 }
  0x47   :  { %359 = vtanh.f32 %v185_v31  ;;  %v186_v40 = vadd.f32 %v523_v28, %v177_v33  ;;  %v213_v42 = vmul.f32 %v344_v27, %v518_v22  ;;  %v103_v49 = vadd.f32 %v506_v12, %v94_v56 }
  0x48   :  { %361 = vtanh.f32 %v228_v37  ;;  %v229_v43 = vadd.f32 %v525_v29, %v220_v38  ;;  %v178_v44 = vadd.f32 %v170_v39, %v161_v34  ;;  %v129_v53 = vmul.f32 %v502_v9, %v568_v36 }
  0x49   :  { %v348_v47 = vpop.eup %347  ;;  %363 = vtanh.f32 %v186_v40  ;;  %v221_v48 = vadd.f32 %v213_v42, %v204_v41  ;;  %v622_v3 = vstv %s600_s17  ;;  %v162_v11 = vmul.f32 %v346_v35, %v512_v18 }
  0x4a   :  { %v350_v50 = vpop.eup %349  ;;  %v242_v51 = vmul.f32 %v348_v47, %v528_v32  ;;  %365 = vtanh.f32 %v229_v43  ;;  %v187_v52 = vadd.f32 %v523_v28, %v178_v44  ;;  %v137_v30 = vadd.f32 %v129_v53, %v120_v46 }
  0x4b   :  { %v251_v2 = vmul.f32 %v350_v50, %v577_v45  ;;  %v230_v54 = vadd.f32 %v525_v29, %v221_v48  ;;  %367 = vtanh.f32 %v145_v55  ;;  %v205_v14 = vmul.f32 %v346_v35, %v514_v19 }
  0x4c   :  { %369 = vtanh.f32 %v187_v52  ;;  %v352_v57 = vpop.eup %351  ;;  %v146_v58 = vadd.f32 %v508_v13, %v137_v30 }
  0x4d   :  { %v259_v12 = vadd.f32 %v251_v2, %v242_v51  ;;  %371 = vtanh.f32 %v230_v54  ;;  %v354_v56 = vpop.eup %353  ;;  %v243_v7 = vmul.f32 %v352_v57, %v528_v32 }
  0x4e   :  { %373 = vtanh.f32 %v103_v49  ;;  %v252_v36 = vmul.f32 %v354_v56, %v577_v45 }
  0x4f   :  { %v356_v59 = vpop.eup %355  ;;  %v268_v9 = vadd.f32 %v622_v3, %v259_v12  ;;  %375 = vtanh.f32 %v146_v58 }
  0x50   :  { %v358_v60 = vpop.eup %357  ;;  %v244_v55 = vmul.f32 %v356_v59, %v528_v32  ;;  %v260_v62 = vadd.f32 %v252_v36, %v243_v7 }
  0x51   :  { %v360_v61 = vpop.eup %359  ;;  %276 = vst [vmem:[#allocation7] sm:$0xff] %v268_v9  ;;  %v253_v63 = vmul.f32 %v358_v60, %v577_v45 }
  0x52   :  { %v362_v0 = vpop.eup %361  ;;  %v245_v1 = vmul.f32 %v360_v61, %v528_v32  ;;  %v269_v13 = vadd.f32 %v622_v3, %v260_v62 }
  0x53   :  { %v364_v4 = vpop.eup %363  ;;  %v261_v5 = vadd.f32 %v253_v63, %v244_v55  ;;  %v254_v6 = vmul.f32 %v362_v0, %v577_v45 }
  0x54   :  { %v366_v8 = vpop.eup %365  ;;  %v246_v10 = vmul.f32 %v364_v4, %v528_v32  ;;  %277 = vst [vmem:[#allocation7 + $0x8] sm:$0xff] %v269_v13 }
  0x55   :  { %v368_v15 = vpop.eup %367  ;;  %v270_v16 = vadd.f32 %v622_v3, %v261_v5  ;;  %v262_v17 = vadd.f32 %v254_v6, %v245_v1  ;;  %v255_v20 = vmul.f32 %v366_v8, %v577_v45 }
  0x56   :  { %v370_v23 = vpop.eup %369  ;;  %v171_v24 = vmul.f32 %v368_v15, %v516_v21  ;;  %v214_v25 = vmul.f32 %v368_v15, %v518_v22 }
  0x57   :  { %v372_v26 = vpop.eup %371  ;;  %278 = vst [vmem:[#allocation7 + $0x10] sm:$0xff] %v270_v16  ;;  %v271_v27 = vadd.f32 %v622_v3, %v262_v17  ;;  %v263_v31 = vadd.f32 %v255_v20, %v246_v10  ;;  %v247_v33 = vmul.f32 %v370_v23, %v528_v32 }
  0x58   :  { %v374_v34 = vpop.eup %373  ;;  %v256_v35 = vmul.f32 %v372_v26, %v577_v45  ;;  %v179_v37 = vadd.f32 %v171_v24, %v162_v11  ;;  %v222_v38 = vadd.f32 %v214_v25, %v205_v14 }
  0x59   :  { %279 = vst [vmem:[#allocation7 + $0x18] sm:$0xff] %v271_v27  ;;  %v272_v39 = vadd.f32 %v622_v3, %v263_v31  ;;  %v163_v40 = vmul.f32 %v374_v34, %v512_v18  ;;  %v206_v41 = vmul.f32 %v374_v34, %v514_v19  ;;  %v376_v42 = vpop.eup %375 }
  0x5a   :  { %v264_v43 = vadd.f32 %v256_v35, %v247_v33  ;;  %v188_v44 = vadd.f32 %v523_v28, %v179_v37  ;;  %v231_v46 = vadd.f32 %v525_v29, %v222_v38  ;;  %v172_v47 = vmul.f32 %v376_v42, %v516_v21 }
  0x5b   :  { %280 = vst [vmem:[#allocation7 + $0x20] sm:$0xff] %v272_v39  ;;  %v215_v48 = vmul.f32 %v376_v42, %v518_v22 }
  0x5c   :  { %v273_v49 = vadd.f32 %v622_v3, %v264_v43  ;;  %377 = vtanh.f32 %v188_v44  ;;  %v180_v50 = vadd.f32 %v172_v47, %v163_v40 }
  0x5d   :  { %379 = vtanh.f32 %v231_v46  ;;  %v223_v51 = vadd.f32 %v215_v48, %v206_v41 }
  0x5e   :  { %281 = vst [vmem:[#allocation7 + $0x28] sm:$0xff] %v273_v49  ;;  %v189_v18 = vadd.f32 %v523_v28, %v180_v50 }
  0x5f   :  { %v232_v19 = vadd.f32 %v525_v29, %v223_v51 }
  0x60   :  { %381 = vtanh.f32 %v189_v18 }
  0x61   :  { %383 = vtanh.f32 %v232_v19 }
  0x66   :  { %v378_v52 = vpop.eup %377 }
  0x67   :  { %v380_v53 = vpop.eup %379  ;;  %v248_v2 = vmul.f32 %v378_v52, %v528_v32 }
  0x68   :  { %v257_v21 = vmul.f32 %v380_v53, %v577_v45 }
  0x6a   :  { %v265_v22 = vadd.f32 %v257_v21, %v248_v2  ;;  %v382_v54 = vpop.eup %381 }
  0x6b   :  { %v384_v30 = vpop.eup %383  ;;  %v249_v12 = vmul.f32 %v382_v54, %v528_v32 }
  0x6c   :  { %v274_v57 = vadd.f32 %v622_v3, %v265_v22  ;;  %v258_v56 = vmul.f32 %v384_v30, %v577_v45 }
  0x6e   :  { %282 = vst [vmem:[#allocation7 + $0x30] sm:$0xff] %v274_v57  ;;  %v266_v28 = vadd.f32 %v258_v56, %v249_v12 }
  0x70   :  { %v275_v29 = vadd.f32 %v622_v3, %v266_v28 }
  0x72   :  { %283 = vst [vmem:[#allocation7 + $0x38] sm:$0xff] %v275_v29 }
  0x73   :  { %428 = shalt.err (!%p425_p1)
}
  0x74   :  { %s429_s23 = scalar_lea.hbm %s676_s2, 1024 }
  0x75   :  { %p430_p2 = scmp.ne.s32.totalorder %s676_s2, %s429_s23  ;;  %p433_p3 = scmp.lt.u32.totalorder %s429_s23, %s676_s2 }
  0x77   :  { %p435_p4 = pnand %p433_p3, %p430_p2 }
  0x79   :  { %438 = shalt.err (!%p435_p4)
}
  0x7a   :  { %295 = dma.vmem_to_hbm [thread:$0]  %s290_s19, 1024, %s676_s2, [#allocation4], %s447_s0, %s447_s0, %s448_s29  }
  0x7b   :  { %443 = dma.done.wait [#allocation4], 1024  }
  0x7c   :  { %444 = vsyncadd [#allocation4], 4294966272 }
  0x7d   :  { %299 = vsyncpa [#allocation3], 1 }
  0x7e   :  { %300 = vsyncpa [#allocation4], 1 }
  0x7f   :  { %301 = vsyncpa [#allocation5], 1 }

</bundles_post_ra>
